<compile_context>
chip_gen: v5e
topology: v5e:2x2
jax: 0.10.0
libtpu: 0.0.40
codegen_flags: <defaults>
</compile_context>

<pallas_src>
import numpy as np
import jax
import jax.numpy as jnp
from jax.experimental import pallas as pl
from jax.experimental.pallas import tpu as pltpu


# ---------------------------------------------------------------------------
# Generation-aware VMEM sizing (v5e/v6e: 128 MiB, v7x: 64 MiB per TensorCore)
# ---------------------------------------------------------------------------
def _vmem_budgets():
    try:
        cap = int(pltpu.get_tpu_info().vmem_capacity_bytes)
    except Exception:
        cap = 64 * 1024 * 1024                       # conservative fallback, safe everywhere
    vmem_limit = min(int(cap * 0.75), cap - (8 << 20))   # leave Mosaic/internal headroom
    tile_budget = int(vmem_limit * 0.65)
    return vmem_limit, tile_budget


def _pick_row_tile(B, D, in_itemsize, budget_bytes):
    """Largest row tile tb (multiple of 8 dividing B, tb <= B//2 so the parallel row
    axis spans >= 2 tiles for v7x megacore) whose per-step VMEM footprint fits."""
    if B % 8 != 0:
        # Legal full-dim block: teacher/student are 3-D (views, B, D), so tb == B equals
        # the full second-to-last dim of those arrays.
        return B

    def est(tb):
        io = 6 * tb * D * in_itemsize      # teacher (2,tb,D) + student (1,tb,D), double-buffered
        qcache = 12 * tb * D               # (3,tb,D) f32 normalized-teacher cache (scratch)
        temps = 16 * tb * D                # compiler-managed f32 intermediates / spilled vregs
        return io + qcache + temps + (1 << 17)

    hi = B // 2 if B >= 16 else B
    cands = [t for t in range(8, hi + 1, 8) if B % t == 0 and est(t) <= budget_bytes]
    return max(cands) if cands else 8


# ---------------------------------------------------------------------------
# Kernel 1: DINO loss.  grid = (row_tiles, ncrops)
#   r (parallel)  : row tile inside the per-crop batch
#   v (arbitrary) : student view; teacher q-cache + loss accumulator carry over v
# ---------------------------------------------------------------------------
def _dino_kernel(scal_ref, t_ref, s_ref, c_ref,      # inputs (scal in SMEM)
                 loss_ref,                            # output (per row tile, lane-dense)
                 q_ref, acc_ref):                     # scratch
    v = pl.program_id(1)
    inv_tt = scal_ref[0]      # 1 / teacher_temp
    inv_st = scal_ref[1]      # 1 / student_temp
    scale = scal_ref[2]       # 1 / (n_loss_terms * B)

    # ---- once per row tile: cache NORMALIZED teacher distributions q0, q1, q0+q1 ----
    @pl.when(v == 0)
    def _teacher():
        t = (t_ref[...].astype(jnp.float32) - c_ref[...].astype(jnp.float32)) * inv_tt
        t = t - jnp.max(t, axis=-1, keepdims=True)
        et = jnp.exp(t)                                           # (2, tb, D)
        q = et / jnp.sum(et, axis=-1, keepdims=True)              # exact softmax
        q_ref[0] = q[0]
        q_ref[1] = q[1]
        q_ref[2] = q[0] + q[1]
        acc_ref[...] = jnp.zeros_like(acc_ref)

    # ---- student view v:  CE = m*logsumexp(s') - q·s'   (per-row max shift cancels) ----
    s = s_ref[0].astype(jnp.float32) * inv_st                     # (tb, D)
    s = s - jnp.max(s, axis=-1, keepdims=True)
    lse = jnp.log(jnp.sum(jnp.exp(s), axis=-1, keepdims=True))    # (tb, 1)
    lse_sum = jnp.sum(lse)                                        # scalar

    @pl.when(v == 0)          # pairs with teacher view 1 only
    def _pair_v0():
        acc_ref[...] += (lse_sum - jnp.sum(q_ref[1] * s)) * scale

    @pl.when(v == 1)          # pairs with teacher view 0 only
    def _pair_v1():
        acc_ref[...] += (lse_sum - jnp.sum(q_ref[0] * s)) * scale

    @pl.when(v >= 2)          # pairs with both teacher views (one fused reduce via q0+q1)
    def _pair_both():
        acc_ref[...] += (2.0 * lse_sum - jnp.sum(q_ref[2] * s)) * scale

    # ---- single lane-dense store of the per-tile partial ----
    @pl.when(v == pl.num_programs(1) - 1)
    def _store():
        loss_ref[...] = jnp.broadcast_to(acc_ref[...], loss_ref.shape)


def dino_loss_pallas(teacher_output, student_output, center,
                     teacher_temp, student_temp, ncrops):
    two_b, D = teacher_output.shape
    B = two_b // 2
    n_loss_terms = 2 * (ncrops - 1)

    vmem_limit, tile_budget = _vmem_budgets()
    tb = _pick_row_tile(B, D, teacher_output.dtype.itemsize, tile_budget)
    nrt = B // tb

    # Runtime scalars in SMEM (epoch-varying teacher temp does NOT trigger a recompile).
    inv_tt = 1.0 / jnp.asarray(teacher_temp, jnp.float32)
    inv_st = jnp.float32(1.0 / student_temp)
    scale = jnp.float32(1.0 / (n_loss_terms * B))
    scal = jnp.stack([inv_tt, inv_st, scale]).astype(jnp.float32)   # (3,)

    teacher3 = teacher_output.reshape(2, B, D)
    student3 = student_output.reshape(ncrops, B, D)

    loss_tiles = pl.pallas_call(
        _dino_kernel,
        out_shape=jax.ShapeDtypeStruct((nrt * 8, 128), jnp.float32),
        grid_spec=pltpu.PrefetchScalarGridSpec(
            num_scalar_prefetch=0,
            grid=(nrt, ncrops),
            in_specs=[
                pl.BlockSpec(memory_space=pltpu.MemorySpace.SMEM),     # runtime scalars
                pl.BlockSpec((2, tb, D), lambda r, v: (0, r, 0)),      # teacher (both views)
                pl.BlockSpec((1, tb, D), lambda r, v: (v, r, 0)),      # student view v
                pl.BlockSpec((1, D), lambda r, v: (0, 0)),             # center
            ],
            out_specs=pl.BlockSpec((8, 128), lambda r, v: (r, 0)),     # per-tile loss partial
            scratch_shapes=[
                pltpu.VMEM((3, tb, D), jnp.float32),   # q0, q1, q0+q1 (normalized)
                pltpu.VMEM((1, 1), jnp.float32),       # loss accumulator
            ],
        ),
        compiler_params=pltpu.CompilerParams(
            dimension_semantics=("parallel", "arbitrary"),
            vmem_limit_bytes=vmem_limit),
    )(scal, teacher3, student3, center)

    return jnp.sum(loss_tiles.reshape(nrt, 8, 128)[:, 0, 0])


# ---------------------------------------------------------------------------
# Kernel 2: centroid (CrOC) loss — tiny tensors, one whole-array kernel step.
# ---------------------------------------------------------------------------
def _croc_kernel(scal_ref, t_ref, s_ref, c_ref, loss_ref):
    inv_tt = scal_ref[0:1, 0:1]
    inv_st = scal_ref[0:1, 1:2]
    scale = scal_ref[0:1, 2:3]      # 0.5 / Nc

    t = (t_ref[...].astype(jnp.float32) - c_ref[...].astype(jnp.float32)) * inv_tt
    t = t - jnp.max(t, axis=-1, keepdims=True)
    et = jnp.exp(t)
    q = et / jnp.sum(et, axis=-1, keepdims=True)                  # (2, Nc, Dc)

    s = s_ref[...].astype(jnp.float32) * inv_st                   # (2, Nc, Dc)
    s = s - jnp.max(s, axis=-1, keepdims=True)
    lse = jnp.log(jnp.sum(jnp.exp(s), axis=-1, keepdims=True))    # (2, Nc, 1)

    # crossed views, CE = lse(s) - q·s per row (teacher rows sum to 1, row-max cancels)
    term0 = jnp.sum(lse[1]) - jnp.sum(q[0] * s[1])   # teacher v1 with student v2
    term1 = jnp.sum(lse[0]) - jnp.sum(q[1] * s[0])   # teacher v2 with student v1
    loss_ref[...] = (term0 + term1) * scale


def croc_centroid_loss_pallas(teacher_centroids, student_centroids, center_c,
                              teacher_temp_c, student_temp_c):
    two_n, Dc = teacher_centroids.shape
    Nc = two_n // 2
    inv_tt = 1.0 / jnp.asarray(teacher_temp_c, jnp.float32)
    inv_st = jnp.float32(1.0 / student_temp_c)
    scale = jnp.float32(0.5 / Nc)
    scal = (jnp.zeros((1, 128), jnp.float32)
            .at[0, 0].set(inv_tt).at[0, 1].set(inv_st).at[0, 2].set(scale))

    loss_c = pl.pallas_call(
        _croc_kernel,
        out_shape=jax.ShapeDtypeStruct((1, 1), jnp.float32),
        compiler_params=pltpu.CompilerParams(vmem_limit_bytes=32 * 1024 * 1024),
    )(scal,
      teacher_centroids.reshape(2, Nc, Dc),
      student_centroids.reshape(2, Nc, Dc),
      center_c)
    return loss_c[0, 0]


# ---------------------------------------------------------------------------
# Module-equivalent forward (glue in plain JAX)
# ---------------------------------------------------------------------------
def croc_loss_forward(student_output, teacher_output, epoch,
                      student_centroids, teacher_centroids,
                      center, center_c, *,
                      ncrops, teacher_temp_schedule, teacher_temp_schedule_c,
                      student_temp=0.1, student_temp_c=0.1,
                      center_momentum=0.9, center_momentum_c=0.9):
    temp = jnp.asarray(teacher_temp_schedule, jnp.float32)[epoch]
    temp_c = jnp.asarray(teacher_temp_schedule_c, jnp.float32)[epoch]

    total_loss = dino_loss_pallas(
        teacher_output, student_output, center, temp, student_temp, ncrops)

    # update_center() with world_size == 1; the column-sum is a plain f32 XLA reduce so the
    # EMA stays exact even when the streamed kernel inputs are bf16.
    # TODO(synk): dist.all_reduce across devices and the no-grad diagnostic metrics
    #             (teacher_entropy / kl_div / centroids_counter buffers) are distributed
    #             bookkeeping with no single-device Pallas equivalent and are not translated.
    batch_center = (jnp.sum(teacher_output.astype(jnp.float32), axis=0, keepdims=True)
                    / teacher_output.shape[0])
    new_center = center * center_momentum + batch_center * (1.0 - center_momentum)

    loss_c = jnp.float32(0.0)
    new_center_c = center_c
    if student_centroids is not None and teacher_centroids is not None:
        loss_c = croc_centroid_loss_pallas(
            teacher_centroids, student_centroids, center_c, temp_c, student_temp_c)
        batch_center_c = (jnp.sum(teacher_centroids.astype(jnp.float32), axis=0, keepdims=True)
                          / teacher_centroids.shape[0])
        new_center_c = (center_c * center_momentum_c
                        + batch_center_c * (1.0 - center_momentum_c))

    return total_loss, loss_c, new_center, new_center_c


# ---------------------------------------------------------------------------
# Pure-JAX reference (mirrors the PyTorch forward) for verification
# ---------------------------------------------------------------------------
def _reference(student_output, teacher_output, epoch,
               student_centroids, teacher_centroids, center, center_c, *,
               ncrops, teacher_temp_schedule, teacher_temp_schedule_c,
               student_temp=0.1, student_temp_c=0.1):
    student_out = student_output / student_temp
    student_chunks = jnp.split(student_out, ncrops, axis=0)
    temp = float(teacher_temp_schedule[epoch])
    teacher_out = jax.nn.softmax((teacher_output - center) / temp, axis=-1)
    teacher_chunks = jnp.split(teacher_out, 2, axis=0)

    total_loss = 0.0
    n_loss_terms = 0
    for iq, q in enumerate(teacher_chunks):
        for v in range(ncrops):
            if v == iq:
                continue
            loss = jnp.sum(-q * jax.nn.log_softmax(student_chunks[v], axis=-1), axis=-1)
            total_loss += loss.mean()
            n_loss_terms += 1
    total_loss = total_loss / n_loss_terms

    loss_c = 0.0
    if student_centroids is not None and teacher_centroids is not None:
        student_cent = student_centroids / student_temp_c
        temp_c = float(teacher_temp_schedule_c[epoch])
        teacher_cent = jax.nn.softmax((teacher_centroids - center_c) / temp_c, axis=-1)
        s1, s2 = jnp.split(student_cent, 2, axis=0)
        t1, t2 = jnp.split(teacher_cent, 2, axis=0)
        loss_c = loss_c + jnp.sum(-t1 * jax.nn.log_softmax(s2, axis=-1), axis=-1).mean()
        loss_c = loss_c + jnp.sum(-t2 * jax.nn.log_softmax(s1, axis=-1), axis=-1).mean()
        loss_c = loss_c / 2.0
    return total_loss, loss_c


if __name__ == "__main__":
    # Small, module-consistent shapes (B=16 exercises row tiling: tb=8, 2 row tiles)
    ncrops = 4        # total crops; first 2 are the "global" (teacher) views
    B = 16            # per-crop batch size
    out_dim = 256     # DINO head dim
    Nc = 8            # centroids per view
    out_dim_c = 128   # centroid head dim
    nepochs = 100
    warmup_epochs = 10
    epoch = 5

    teacher_temp_schedule = np.concatenate(
        (np.linspace(0.04, 0.07, warmup_epochs),
         np.ones(nepochs - warmup_epochs) * 0.07))
    teacher_temp_schedule_c = np.concatenate(
        (np.linspace(0.04, 0.07, warmup_epochs),
         np.ones(nepochs - warmup_epochs) * 0.07))

    key = jax.random.PRNGKey(0)
    k1, k2, k3, k4 = jax.random.split(key, 4)
    student_output = jax.random.normal(k1, (ncrops * B, out_dim), jnp.float32)
    teacher_output = jax.random.normal(k2, (2 * B, out_dim), jnp.float32)
    student_centroids = jax.random.normal(k3, (2 * Nc, out_dim_c), jnp.float32)
    teacher_centroids = jax.random.normal(k4, (2 * Nc, out_dim_c), jnp.float32)
    center = jnp.zeros((1, out_dim), jnp.float32)       # deterministic buffers (as in __init__)
    center_c = jnp.zeros((1, out_dim_c), jnp.float32)

    # ---- f32 path: full forward, checked against the f32 reference ----
    total_loss, loss_c, new_center, new_center_c = croc_loss_forward(
        student_output, teacher_output, epoch,
        student_centroids, teacher_centroids, center, center_c,
        ncrops=ncrops,
        teacher_temp_schedule=teacher_temp_schedule,
        teacher_temp_schedule_c=teacher_temp_schedule_c)
    jax.block_until_ready((total_loss, loss_c, new_center, new_center_c))

    ref_total, ref_c = _reference(
        student_output, teacher_output, epoch,
        student_centroids, teacher_centroids, center, center_c,
        ncrops=ncrops,
        teacher_temp_schedule=teacher_temp_schedule,
        teacher_temp_schedule_c=teacher_temp_schedule_c)

    assert np.allclose(float(total_loss), float(ref_total), rtol=1e-4, atol=1e-4), \
        (float(total_loss), float(ref_total))
    assert np.allclose(float(loss_c), float(ref_c), rtol=1e-4, atol=1e-4), \
        (float(loss_c), float(ref_c))

    # center EMA (world_size == 1)
    ref_center = center * 0.9 + (jnp.sum(teacher_output, axis=0, keepdims=True)
                                 / teacher_output.shape[0]) * 0.1
    ref_center_c = center_c * 0.9 + (jnp.sum(teacher_centroids, axis=0, keepdims=True)
                                     / teacher_centroids.shape[0]) * 0.1
    assert np.allclose(np.asarray(new_center), np.asarray(ref_center), rtol=1e-5, atol=1e-5)
    assert np.allclose(np.asarray(new_center_c), np.asarray(ref_center_c), rtol=1e-5, atol=1e-5)

    # ---- bf16 streaming path (halves HBM traffic / VMEM blocks); compared against the
    #      reference evaluated on the same bf16-rounded values upcast to f32 ----
    s_bf16 = student_output.astype(jnp.bfloat16)
    t_bf16 = teacher_output.astype(jnp.bfloat16)
    loss_bf16 = dino_loss_pallas(t_bf16, s_bf16, center,
                                 float(teacher_temp_schedule[epoch]), 0.1, ncrops)
    jax.block_until_ready(loss_bf16)
    ref_bf16, _ = _reference(
        s_bf16.astype(jnp.float32), t_bf16.astype(jnp.float32), epoch,
        None, None, center, center_c,
        ncrops=ncrops,
        teacher_temp_schedule=teacher_temp_schedule,
        teacher_temp_schedule_c=teacher_temp_schedule_c)
    assert np.allclose(float(loss_bf16), float(ref_bf16), rtol=1e-3, atol=1e-3), \
        (float(loss_bf16), float(ref_bf16))

    print("KERNEL_OK")
</pallas_src>

<mosaic_0001>
module attributes {stable_mosaic.version = 11 : i64} {
  func.func @_dino_kernel(%arg0: i32, %arg1: i32, %arg2: memref<3xf32, #tpu.memory_space<smem>>, %arg3: memref<2x8x256xf32, #tpu.memory_space<vmem>>, %arg4: memref<1x8x256xf32, #tpu.memory_space<vmem>>, %arg5: memref<1x256xf32, #tpu.memory_space<vmem>>, %arg6: memref<8x128xf32, #tpu.memory_space<vmem>>, %arg7: memref<3x8x256xf32, #tpu.memory_space<vmem>>, %arg8: memref<1x1xf32, #tpu.memory_space<vmem>>) attributes {dimension_semantics = [#tpu.dimension_semantics<parallel>, #tpu.dimension_semantics<arbitrary>], iteration_bounds = array<i64: 2, 4>, scalar_prefetch = 0 : i64, scratch_operands = 2 : i64, tpu.core_type = #tpu.core_type<tc>, window_params = [{transform_indices = @transform_0, window_bounds = array<i64: 3>}, {transform_indices = @transform_1, window_bounds = array<i64: 2, 8, 256>}, {transform_indices = @transform_2, window_bounds = array<i64: 1, 8, 256>}, {pipeline_mode = #tpu.pipeline_mode<synchronous>, transform_indices = @transform_3, window_bounds = array<i64: 1, 256>}, {transform_indices = @transform_4, window_bounds = array<i64: 8, 128>}]} {
    %c0 = arith.constant 0 : index
    %0 = memref.load %arg2[%c0] : memref<3xf32, #tpu.memory_space<smem>>
    %c1 = arith.constant 1 : index
    %1 = memref.load %arg2[%c1] : memref<3xf32, #tpu.memory_space<smem>>
    %c2 = arith.constant 2 : index
    %2 = memref.load %arg2[%c2] : memref<3xf32, #tpu.memory_space<smem>>
    %c0_i32 = arith.constant 0 : i32
    %3 = arith.cmpi eq, %arg1, %c0_i32 : i32
    %4 = arith.extui %3 : i1 to i32
    %c0_i32_0 = arith.constant 0 : i32
    %5 = arith.cmpi ne, %4, %c0_i32_0 : i32
    scf.if %5 {
      %c0_11 = arith.constant 0 : index
      %c0_12 = arith.constant 0 : index
      %c0_13 = arith.constant 0 : index
      %34 = vector.load %arg3[%c0_11, %c0_12, %c0_13] : memref<2x8x256xf32, #tpu.memory_space<vmem>>, vector<2x8x256xf32>
      %c0_14 = arith.constant 0 : index
      %c0_15 = arith.constant 0 : index
      %35 = vector.load %arg5[%c0_14, %c0_15] : memref<1x256xf32, #tpu.memory_space<vmem>>, vector<1x256xf32>
      %36 = vector.shape_cast %35 : vector<1x256xf32> to vector<1x1x256xf32>
      %37 = vector.broadcast %36 : vector<1x1x256xf32> to vector<2x8x256xf32>
      %38 = arith.subf %34, %37 : vector<2x8x256xf32>
      %39 = vector.broadcast %0 : f32 to vector<2x8x256xf32>
      %40 = arith.mulf %38, %39 : vector<2x8x256xf32>
      %cst_16 = arith.constant dense<0xFF800000> : vector<2x8xf32>
      %41 = vector.multi_reduction <maximumf>, %40, %cst_16 [2] : vector<2x8x256xf32> to vector<2x8xf32>
      %42 = vector.shape_cast %41 : vector<2x8xf32> to vector<2x8x1xf32>
      %43 = vector.broadcast %42 : vector<2x8x1xf32> to vector<2x8x256xf32>
      %44 = arith.subf %40, %43 : vector<2x8x256xf32>
      %45 = math.exp %44 : vector<2x8x256xf32>
      %cst_17 = arith.constant dense<0.000000e+00> : vector<2x8xf32>
      %46 = vector.multi_reduction <add>, %45, %cst_17 [2] : vector<2x8x256xf32> to vector<2x8xf32>
      %47 = vector.shape_cast %46 : vector<2x8xf32> to vector<2x8x1xf32>
      %48 = vector.broadcast %47 : vector<2x8x1xf32> to vector<2x8x256xf32>
      %49 = arith.divf %45, %48 : vector<2x8x256xf32>
      %50 = vector.extract_strided_slice %49 {offsets = [0, 0, 0], sizes = [1, 8, 256], strides = [1, 1, 1]} : vector<2x8x256xf32> to vector<1x8x256xf32>
      %51 = vector.shape_cast %50 : vector<1x8x256xf32> to vector<8x256xf32>
      %c0_18 = arith.constant 0 : index
      %c0_19 = arith.constant 0 : index
      %c0_20 = arith.constant 0 : index
      %52 = vector.load %arg7[%c0_18, %c0_19, %c0_20] : memref<3x8x256xf32, #tpu.memory_space<vmem>>, vector<1x8x256xf32>
      %53 = vector.shape_cast %52 : vector<1x8x256xf32> to vector<8x256xf32>
      %54 = vector.shape_cast %51 : vector<8x256xf32> to vector<1x8x256xf32>
      tpu.vector_store %arg7[%c0_18, %c0_19, %c0_20], %54 {strides = array<i32>} : memref<3x8x256xf32, #tpu.memory_space<vmem>>, vector<1x8x256xf32>,
      %55 = vector.extract_strided_slice %49 {offsets = [1, 0, 0], sizes = [1, 8, 256], strides = [1, 1, 1]} : vector<2x8x256xf32> to vector<1x8x256xf32>
      %56 = vector.shape_cast %55 : vector<1x8x256xf32> to vector<8x256xf32>
      %c1_21 = arith.constant 1 : index
      %c0_22 = arith.constant 0 : index
      %c0_23 = arith.constant 0 : index
      %57 = vector.load %arg7[%c1_21, %c0_22, %c0_23] : memref<3x8x256xf32, #tpu.memory_space<vmem>>, vector<1x8x256xf32>
      %58 = vector.shape_cast %57 : vector<1x8x256xf32> to vector<8x256xf32>
      %59 = vector.shape_cast %56 : vector<8x256xf32> to vector<1x8x256xf32>
      tpu.vector_store %arg7[%c1_21, %c0_22, %c0_23], %59 {strides = array<i32>} : memref<3x8x256xf32, #tpu.memory_space<vmem>>, vector<1x8x256xf32>,
      %60 = vector.extract_strided_slice %49 {offsets = [0, 0, 0], sizes = [1, 8, 256], strides = [1, 1, 1]} : vector<2x8x256xf32> to vector<1x8x256xf32>
      %61 = vector.shape_cast %60 : vector<1x8x256xf32> to vector<8x256xf32>
      %62 = vector.extract_strided_slice %49 {offsets = [1, 0, 0], sizes = [1, 8, 256], strides = [1, 1, 1]} : vector<2x8x256xf32> to vector<1x8x256xf32>
      %63 = vector.shape_cast %62 : vector<1x8x256xf32> to vector<8x256xf32>
      %64 = arith.addf %61, %63 : vector<8x256xf32>
      %c2_24 = arith.constant 2 : index
      %c0_25 = arith.constant 0 : index
      %c0_26 = arith.constant 0 : index
      %65 = vector.load %arg7[%c2_24, %c0_25, %c0_26] : memref<3x8x256xf32, #tpu.memory_space<vmem>>, vector<1x8x256xf32>
      %66 = vector.shape_cast %65 : vector<1x8x256xf32> to vector<8x256xf32>
      %67 = vector.shape_cast %64 : vector<8x256xf32> to vector<1x8x256xf32>
      tpu.vector_store %arg7[%c2_24, %c0_25, %c0_26], %67 {strides = array<i32>} : memref<3x8x256xf32, #tpu.memory_space<vmem>>, vector<1x8x256xf32>,
      %cst_27 = arith.constant 0.000000e+00 : f32
      %68 = vector.broadcast %cst_27 : f32 to vector<1x1xf32>
      %c0_28 = arith.constant 0 : index
      %c0_29 = arith.constant 0 : index
      %69 = vector.load %arg8[%c0_28, %c0_29] : memref<1x1xf32, #tpu.memory_space<vmem>>, vector<1x1xf32>
      tpu.vector_store %arg8[%c0_28, %c0_29], %68 {strides = array<i32>} : memref<1x1xf32, #tpu.memory_space<vmem>>, vector<1x1xf32>,
    } else {
    }
    %c0_1 = arith.constant 0 : index
    %c0_2 = arith.constant 0 : index
    %c0_3 = arith.constant 0 : index
    %6 = vector.load %arg4[%c0_1, %c0_2, %c0_3] : memref<1x8x256xf32, #tpu.memory_space<vmem>>, vector<1x8x256xf32>
    %7 = vector.shape_cast %6 : vector<1x8x256xf32> to vector<8x256xf32>
    %8 = vector.broadcast %1 : f32 to vector<8x256xf32>
    %9 = arith.mulf %7, %8 : vector<8x256xf32>
    %cst = arith.constant dense<0xFF800000> : vector<8xf32>
    %10 = vector.multi_reduction <maximumf>, %9, %cst [1] : vector<8x256xf32> to vector<8xf32>
    %11 = vector.shape_cast %10 : vector<8xf32> to vector<8x1xf32>
    %12 = vector.broadcast %11 : vector<8x1xf32> to vector<8x256xf32>
    %13 = arith.subf %9, %12 : vector<8x256xf32>
    %14 = math.exp %13 : vector<8x256xf32>
    %cst_4 = arith.constant dense<0.000000e+00> : vector<8xf32>
    %15 = vector.multi_reduction <add>, %14, %cst_4 [1] : vector<8x256xf32> to vector<8xf32>
    %16 = vector.shape_cast %15 : vector<8xf32> to vector<8x1xf32>
    %17 = math.log %16 : vector<8x1xf32>
    %18 = vector.shape_cast %17 : vector<8x1xf32> to vector<1x8x1xf32>
    %cst_5 = arith.constant dense<0.000000e+00> : vector<1xf32>
    %19 = vector.multi_reduction <add>, %18, %cst_5 [1, 2] : vector<1x8x1xf32> to vector<1xf32>
    %20 = vector.shape_cast %19 : vector<1xf32> to vector<1x1x1xf32>
    %21 = vector.extract %20[0, 0, 0] : f32 from vector<1x1x1xf32>
    %c0_i32_6 = arith.constant 0 : i32
    %22 = arith.cmpi eq, %arg1, %c0_i32_6 : i32
    %23 = arith.extui %22 : i1 to i32
    %c0_i32_7 = arith.constant 0 : i32
    %24 = arith.cmpi ne, %23, %c0_i32_7 : i32
    scf.if %24 {
      %c0_11 = arith.constant 0 : index
      %c0_12 = arith.constant 0 : index
      %34 = vector.load %arg8[%c0_11, %c0_12] : memref<1x1xf32, #tpu.memory_space<vmem>>, vector<1x1xf32>
      %c1_13 = arith.constant 1 : index
      %c0_14 = arith.constant 0 : index
      %c0_15 = arith.constant 0 : index
      %35 = vector.load %arg7[%c1_13, %c0_14, %c0_15] : memref<3x8x256xf32, #tpu.memory_space<vmem>>, vector<1x8x256xf32>
      %36 = vector.shape_cast %35 : vector<1x8x256xf32> to vector<8x256xf32>
      %37 = arith.mulf %36, %13 : vector<8x256xf32>
      %38 = vector.shape_cast %37 : vector<8x256xf32> to vector<1x8x256xf32>
      %cst_16 = arith.constant dense<0.000000e+00> : vector<1xf32>
      %39 = vector.multi_reduction <add>, %38, %cst_16 [1, 2] : vector<1x8x256xf32> to vector<1xf32>
      %40 = vector.shape_cast %39 : vector<1xf32> to vector<1x1x1xf32>
      %41 = vector.extract %40[0, 0, 0] : f32 from vector<1x1x1xf32>
      %42 = arith.subf %21, %41 : f32
      %43 = arith.mulf %42, %2 : f32
      %44 = vector.broadcast %43 : f32 to vector<1x1xf32>
      %45 = arith.addf %34, %44 : vector<1x1xf32>
      %c0_17 = arith.constant 0 : index
      %c0_18 = arith.constant 0 : index
      %46 = vector.load %arg8[%c0_17, %c0_18] : memref<1x1xf32, #tpu.memory_space<vmem>>, vector<1x1xf32>
      tpu.vector_store %arg8[%c0_17, %c0_18], %45 {strides = array<i32>} : memref<1x1xf32, #tpu.memory_space<vmem>>, vector<1x1xf32>,
    } else {
    }
    %c1_i32 = arith.constant 1 : i32
    %25 = arith.cmpi eq, %arg1, %c1_i32 : i32
    %26 = arith.extui %25 : i1 to i32
    %c0_i32_8 = arith.constant 0 : i32
    %27 = arith.cmpi ne, %26, %c0_i32_8 : i32
    scf.if %27 {
      %c0_11 = arith.constant 0 : index
      %c0_12 = arith.constant 0 : index
      %34 = vector.load %arg8[%c0_11, %c0_12] : memref<1x1xf32, #tpu.memory_space<vmem>>, vector<1x1xf32>
      %c0_13 = arith.constant 0 : index
      %c0_14 = arith.constant 0 : index
      %c0_15 = arith.constant 0 : index
      %35 = vector.load %arg7[%c0_13, %c0_14, %c0_15] : memref<3x8x256xf32, #tpu.memory_space<vmem>>, vector<1x8x256xf32>
      %36 = vector.shape_cast %35 : vector<1x8x256xf32> to vector<8x256xf32>
      %37 = arith.mulf %36, %13 : vector<8x256xf32>
      %38 = vector.shape_cast %37 : vector<8x256xf32> to vector<1x8x256xf32>
      %cst_16 = arith.constant dense<0.000000e+00> : vector<1xf32>
      %39 = vector.multi_reduction <add>, %38, %cst_16 [1, 2] : vector<1x8x256xf32> to vector<1xf32>
      %40 = vector.shape_cast %39 : vector<1xf32> to vector<1x1x1xf32>
      %41 = vector.extract %40[0, 0, 0] : f32 from vector<1x1x1xf32>
      %42 = arith.subf %21, %41 : f32
      %43 = arith.mulf %42, %2 : f32
      %44 = vector.broadcast %43 : f32 to vector<1x1xf32>
      %45 = arith.addf %34, %44 : vector<1x1xf32>
      %c0_17 = arith.constant 0 : index
      %c0_18 = arith.constant 0 : index
      %46 = vector.load %arg8[%c0_17, %c0_18] : memref<1x1xf32, #tpu.memory_space<vmem>>, vector<1x1xf32>
      tpu.vector_store %arg8[%c0_17, %c0_18], %45 {strides = array<i32>} : memref<1x1xf32, #tpu.memory_space<vmem>>, vector<1x1xf32>,
    } else {
    }
    %c2_i32 = arith.constant 2 : i32
    %28 = arith.cmpi sge, %arg1, %c2_i32 : i32
    %29 = arith.extui %28 : i1 to i32
    %c0_i32_9 = arith.constant 0 : i32
    %30 = arith.cmpi ne, %29, %c0_i32_9 : i32
    scf.if %30 {
      %c0_11 = arith.constant 0 : index
      %c0_12 = arith.constant 0 : index
      %34 = vector.load %arg8[%c0_11, %c0_12] : memref<1x1xf32, #tpu.memory_space<vmem>>, vector<1x1xf32>
      %cst_13 = arith.constant 2.000000e+00 : f32
      %35 = arith.mulf %cst_13, %21 : f32
      %c2_14 = arith.constant 2 : index
      %c0_15 = arith.constant 0 : index
      %c0_16 = arith.constant 0 : index
      %36 = vector.load %arg7[%c2_14, %c0_15, %c0_16] : memref<3x8x256xf32, #tpu.memory_space<vmem>>, vector<1x8x256xf32>
      %37 = vector.shape_cast %36 : vector<1x8x256xf32> to vector<8x256xf32>
      %38 = arith.mulf %37, %13 : vector<8x256xf32>
      %39 = vector.shape_cast %38 : vector<8x256xf32> to vector<1x8x256xf32>
      %cst_17 = arith.constant dense<0.000000e+00> : vector<1xf32>
      %40 = vector.multi_reduction <add>, %39, %cst_17 [1, 2] : vector<1x8x256xf32> to vector<1xf32>
      %41 = vector.shape_cast %40 : vector<1xf32> to vector<1x1x1xf32>
      %42 = vector.extract %41[0, 0, 0] : f32 from vector<1x1x1xf32>
      %43 = arith.subf %35, %42 : f32
      %44 = arith.mulf %43, %2 : f32
      %45 = vector.broadcast %44 : f32 to vector<1x1xf32>
      %46 = arith.addf %34, %45 : vector<1x1xf32>
      %c0_18 = arith.constant 0 : index
      %c0_19 = arith.constant 0 : index
      %47 = vector.load %arg8[%c0_18, %c0_19] : memref<1x1xf32, #tpu.memory_space<vmem>>, vector<1x1xf32>
      tpu.vector_store %arg8[%c0_18, %c0_19], %46 {strides = array<i32>} : memref<1x1xf32, #tpu.memory_space<vmem>>, vector<1x1xf32>,
    } else {
    }
    %c3_i32 = arith.constant 3 : i32
    %31 = arith.cmpi eq, %arg1, %c3_i32 : i32
    %32 = arith.extui %31 : i1 to i32
    %c0_i32_10 = arith.constant 0 : i32
    %33 = arith.cmpi ne, %32, %c0_i32_10 : i32
    scf.if %33 {
      %c0_11 = arith.constant 0 : index
      %c0_12 = arith.constant 0 : index
      %34 = vector.load %arg8[%c0_11, %c0_12] : memref<1x1xf32, #tpu.memory_space<vmem>>, vector<1x1xf32>
      %35 = vector.shape_cast %34 : vector<1x1xf32> to vector<1x1xf32>
      %36 = vector.broadcast %35 : vector<1x1xf32> to vector<8x128xf32>
      %c0_13 = arith.constant 0 : index
      %c0_14 = arith.constant 0 : index
      %37 = vector.load %arg6[%c0_13, %c0_14] : memref<8x128xf32, #tpu.memory_space<vmem>>, vector<8x128xf32>
      tpu.vector_store %arg6[%c0_13, %c0_14], %36 {strides = array<i32>} : memref<8x128xf32, #tpu.memory_space<vmem>>, vector<8x128xf32>,
    } else {
    }
    return
  }
  func.func @transform_0(%arg0: i32, %arg1: i32) -> i32 {
    %c0_i32 = arith.constant 0 : i32
    %c0_i32_0 = arith.constant 0 : i32
    return %c0_i32 : i32
  }
  func.func @transform_1(%arg0: i32, %arg1: i32) -> (i32, i32, i32) {
    %c0_i32 = arith.constant 0 : i32
    %c0_i32_0 = arith.constant 0 : i32
    %c0_i32_1 = arith.constant 0 : i32
    return %c0_i32, %arg0, %c0_i32_0 : i32, i32, i32
  }
  func.func @transform_2(%arg0: i32, %arg1: i32) -> (i32, i32, i32) {
    %c0_i32 = arith.constant 0 : i32
    %c0_i32_0 = arith.constant 0 : i32
    return %arg1, %arg0, %c0_i32 : i32, i32, i32
  }
  func.func @transform_3(%arg0: i32, %arg1: i32) -> (i32, i32) {
    %c0_i32 = arith.constant 0 : i32
    %c0_i32_0 = arith.constant 0 : i32
    %c0_i32_1 = arith.constant 0 : i32
    return %c0_i32, %c0_i32_0 : i32, i32
  }
  func.func @transform_4(%arg0: i32, %arg1: i32) -> (i32, i32) {
    %c0_i32 = arith.constant 0 : i32
    %c0_i32_0 = arith.constant 0 : i32
    return %arg0, %c0_i32 : i32, i32
  }
}

</mosaic_0001>

<bundles_post_ra>
// kernel: tpu_custom_call.1
= control target key start
LH: loop header
LB: loop body
LE: loop exit
PB: predicated region body
PF: predicated region fallthrough
CT: control target
= control target key end

     0   :  { %s1334_s0 = inlined_call_operand.hbm [shape: f32[3], index: 0, kind: input, shape index: {}]   ;;  %s1335_s1 = inlined_call_operand.hbm [shape: f32[2,16,256], index: 1, kind: input, shape index: {}]   ;;  %s1336_s2 = inlined_call_operand.hbm [shape: f32[4,16,256], index: 2, kind: input, shape index: {}]   ;;  %s1337_s3 = inlined_call_operand.vmem [shape: f32[1,256], index: 3, kind: input, shape index: {}]   ;;  %s1338_s4 = inlined_call_operand.hbm [shape: f32[16,128], index: 4, kind: output, shape index: {}]  }
   0x1   :  { %1348 = sst [smem:[#allocation23_spill]] %s1334_s0 }
   0x2   :  { %1349 = sst [smem:[#allocation24_spill]] %s1335_s1 }
   0x3   :  { %1350 = sst [smem:[#allocation25_spill]] %s1337_s3 }
   0x4   :  { %1351 = sst [smem:[#allocation26_spill]] %s1338_s4 }
   0x5   :  { %9 = vsyncpa [#allocation7], 0 }
   0x6   :  { %10 = vsyncpa [#allocation5], 0 }
   0x7   :  { %12 = vsyncpa [#allocation5 + $0x1], 0 }
   0x8   :  { %13 = vsyncpa [#allocation10], 0 }
   0x9   :  { %15 = vsyncpa [#allocation10 + $0x1], 0 }
   0xa   :  { %16 = vsyncpa [#allocation6], 0 }
   0xb   :  { %18 = vsyncpa [#allocation6 + $0x1], 0  ;;  %s1054_s15 = smov 0   ;;  %s1056_s16 = smov 0  }
   0xc   :  { %s1058_s17 = smov 0   ;;  %s1060_s18 = smov 0  }
   0xd   :  { %s1062_s19 = smov 0   ;;  %s1064_s20 = smov 0  }
   0xe   :  { %s1066_s21 = smov 0   ;;  %s1068_s22 = smov 0  }
   0xf   :  { %s1070_s23 = smov 0   ;;  %s1072_s24 = smov 0  }
  0x10   :  { %s1074_s25 = smov 0  }
  0x11 LB: > { %1352 = sst [smem:[#allocation16_spill]] %s993_s18  ;;  %s636_s26 = sadd.s32 4294967295, %s1021_s25   ;;  %s1021_s25 = sphi %s1074_s25, %s24_s25   ;;  %s1017_s24 = sphi %s1072_s24, %s1392_s24   ;;  %s1013_s23 = sphi %s1070_s23, %s1391_s23   ;;  %s1009_s22 = sphi %s1068_s22, %s1390_s22   ;;  %s1005_s21 = sphi %s1066_s21, %s1389_s21   ;;  %s1001_s20 = sphi %s1064_s20, %s1388_s20   ;;  %s997_s19 = sphi %s1062_s19, %s1387_s19   ;;  %s993_s18 = sphi %s1060_s18, %s1386_s18   ;;  %s989_s17 = sphi %s1058_s17, %s1385_s17   ;;  %s985_s16 = sphi %s1056_s16, %s1384_s16   ;;  %s981_s15 = sphi %s1054_s15, %s1383_s15  }
  0x12   : > { %1353 = sst [smem:[#allocation17_spill]] %s1005_s21  ;;  %s637_s27 = sadd.s32 4294967294, %s1021_s25  }
  0x13   : > { %1354 = sst [smem:[#allocation18_spill]] %s1009_s22  ;;  %p71_p0 = scmp.ne.s32.totalorder %s1001_s20, %s997_s19 }
  0x14   : > { %p72_p1 = scmp.eq.s32.totalorder %s1021_s25, 0  ;;  %p77_p2 = scmp.ne.s32.totalorder %s997_s19, %s993_s18 }
  0x15   : > { %p1116_p3 = scmp.eq.s32.totalorder %s636_s26, 0  ;;  %p150_p5 = scmp.eq.s32.totalorder %s636_s26, 7 }
  0x16   : > { %p1122_p4 = por %p72_p1, %p71_p0  ;;  %p156_p7 = scmp.eq.s32.totalorder %s637_s27, 7 }
  0x17   : > { %p1128_p6 = por %p1116_p3, %p77_p2  ;;  %p1132_p8 = por %p150_p5, %p71_p0 }
  0x18   : > { %p638_p9 = scmp.ge.s32.totalorder %s1021_s25, 1  ;;  %p1137_p10 = por %p156_p7, %p77_p2 }
  0x19   : > { %s1358_s5 = scalar_select %p1132_p8, 1, 0 }
  0x1a   : > { %s1360_s6 = scalar_select %p1137_p10, 1, 0 }
  0x1b   : > { %1359 = sst [smem:[#allocation19_spill]] %s1358_s5  ;;  %p163_p11 = scmp.lt.s32.totalorder %s1021_s25, 9 }
  0x1c   : > { %1361 = sst [smem:[#allocation20_spill]] %s1360_s6  ;;  %p699_p0 = scmp.lt.s32.totalorder %s1021_s25, 8 }
  0x1d   : > { %s1362_s0 = sld [smem:[#allocation23_spill]]  ;;  %p1145_p12 = pnand %p638_p9, %p163_p11 }
  0x1e   : > { %s189_s11 = sand.u32 1, %s1001_s20   ;;  %p1159_p5 = pnand %p699_p0, %p1122_p4 }
  0x1f   : > { %p683_p13 = pneg %p1145_p12  ;;  %s1023_s13 = smov [#allocation4]  }
  0x20   : > { %s641_s14 = sshll.u32 %s189_s11, 5  ;;  %s664_s26 = sshll.u32 %s1017_s24, 4 }
  0x21   : > { %p684_p2 = pnand %p683_p13, %p1116_p3  ;;  %s1365_s1 = sld [smem:[#allocation24_spill]] }
  0x22   : > { %s193_s29 = scalar_lea.vmem [#allocation8], %s641_s14  ;;  %s1025_s18 = smov 256  }
  0x23   : > { %s175_s9 = sshll.u32 %s1362_s0, 4  ;;  %s201_s6 = sshll.u32 %s193_s29, 4  ;;  %s176_s9 = int_to_ptr.hbm [resolvable:$true] %s175_s9  ;;  %s202_s6 = int_to_ptr.vmem [resolvable:$true] %s201_s6 }
  0x24   : > { %686 = dma.hbm_to_smem (!%p684_p2), %s176_s9, 16, %s1023_s13, [#allocation7]  }
  0x25   : > { %s190_s9 = scalar_lea.sflag [#allocation5], %s189_s11  ;;  %s1024_s13 = smov 512  }
  0x26   : > { %s1026_s4 = smov 16   ;;  %s36_s14 = sadd.s32 1, %s1017_s24 }
  0x27   : > { %s198_s8 = scalar_lea.hbm %s1365_s1, %s664_s26  ;;  %s33_s26 = sadd.s32 1, %s1013_s23 }
  0x28   : > { %s199_s0 = sshll.u32 %s198_s8, 4  ;;  %p34_p4 = scmp.ge.s32.totalorder %s33_s26, 4  ;;  %s200_s0 = int_to_ptr.hbm [resolvable:$true] %s199_s0 }
  0x29   : > { %690 = dma.hbm_to_vmem [thread:$0]  (!%p1159_p5), %s200_s0, 512, %s202_s6, %s190_s9, %s1024_s13, %s1025_s18, %s1026_s4  }
  0x2a   : > { %s64_s27 = sadd.s32 1, %s1001_s20  ;;  %s92_s7 = sadd.s32 1, %s989_s17 }
  0x2b   : > { %s1394_s26 = smov (%p34_p4, %s33_s26), 0  ;;  %s1396_s14 = smov (!%p34_p4, %s36_s14), %s1017_s24 }
  0x2c   : > { %1366 = sst [smem:[#allocation21_spill]] %s1394_s26  ;;  %s87_s11 = ssub.s32 %s1013_s23, %s1394_s26 }
  0x2d   : > { %p99_p7 = scmp.ne.s32.totalorder %s989_s17, %s985_s16  ;;  %p38_p9 = scmp.ge.s32.totalorder %s1396_s14, 2 }
  0x2e   : > { %p105_p11 = scmp.ne.s32.totalorder %s985_s16, %s981_s15  ;;  %s211_s4 = sand.u32 1, %s989_s17  }
  0x2f   : > { %p1184_p13 = por %p99_p7, %p72_p1  ;;  %s1398_s14 = smov (%p38_p9, %s1396_s14), 0 }
  0x30   : > { %p1193_p2 = por %p105_p11, %p1116_p3  ;;  %s61_s6 = ssub.s32 %s1017_s24, %s1398_s14 }
  0x31   : > { %s644_s12 = sshll.u32 %s211_s4, 4  ;;  %p62_p5 = scmp.eq.s32.totalorder %s61_s6, 0 }
  0x32   : > { %s1368_s18 = scalar_select %p1193_p2, 1, 0 }
  0x33   : > { %s89_s15 = sor.u32 %s87_s11, %s61_s6  ;;  %s645_s9 = sshll.u32 %s1017_s24, 1 }
  0x34   : > { %1369 = sst [smem:[#allocation22_spill]] %s1368_s18  ;;  %p90_p4 = scmp.eq.s32.totalorder %s89_s15, 0 }
  0x35   : > { %s1200_s8 = scalar_select %p62_p5, %s1001_s20, %s64_s27  }
  0x36   : > { %s1203_s29 = scalar_select %p90_p4, %s989_s17, %s92_s7  }
  0x37   : > { %s646_s13 = sshll.u32 %s1013_s23, 2  ;;  %s215_s26 = scalar_lea.vmem [#allocation9], %s644_s12 }
  0x38   : > { %s220_s1 = sadd.s32 %s646_s13, %s645_s9  ;;  %s226_s5 = sshll.u32 %s215_s26, 4  ;;  %s227_s5 = int_to_ptr.vmem [resolvable:$true] %s226_s5 }
  0x39   : > { %s647_s22 = sshll.u32 %s220_s1, 3  ;;  %p691_p1 = pnand %p699_p0, %p1184_p13 }
  0x3a   : > { %s222_s18 = scalar_lea.hbm %s1336_s2, %s647_s22  ;;  %s212_s27 = scalar_lea.sflag [#allocation10], %s211_s4 }
  0x3b   : > { %s224_s11 = sshll.u32 %s222_s18, 4  ;;  %235 = sbr.rel (%p1145_p12) target bundleno = 1568 (0x620), region = 36  ;;  %s225_s11 = int_to_ptr.hbm [resolvable:$true] %s224_s11 }
  0x3c   : > { %693 = dma.hbm_to_vmem [thread:$0]  (!%p691_p1), %s225_s11, 256, %s227_s5, %s212_s27  }
  0x40   : > { %964 = dma.done.wait (%p1116_p3), [#allocation7], 16  }
  0x41   : > { %966 = vsyncadd (%p1116_p3), [#allocation7], 4294967280  ;;  %s1221_s1 = sand.u32 1, %s997_s19  }
  0x42   : > { %s650_s3 = sshll.u32 %s1221_s1, 5  ;;  %s243_s21 = scalar_lea.sflag [#allocation5], %s1221_s1 }
  0x43   : > { %s246_s22 = scalar_lea.vmem [#allocation8], %s650_s3 }
  0x44   : > { %968 = dma.done.wait (%p1128_p6), %s243_s21, 512  }
  0x45   : > { %970 = vsyncadd (%p1128_p6), %s243_s21, 4294966784  ;;  %s252_s10 = sand.u32 1, %s985_s16  }
  0x46   : > { %s1230_s26 = sshll.u32 %s252_s10, 4  ;;  %s253_s28 = scalar_lea.sflag [#allocation10], %s252_s10 }
  0x47   : > { %s256_s7 = scalar_lea.vmem [#allocation9], %s1230_s26 }
  0x48   : > { %972 = dma.done.wait (%p1193_p2), %s253_s28, 256  }
  0x49   : > { %974 = vsyncadd (%p1193_p2), %s253_s28, 4294967040 }
  0x4a   : > { %262 = sfence }
  0x4b   : > { %s652_s0 = sshll.u32 %s1221_s1, 3  ;;  %s288_s4 = sld [smem:[#allocation4]] }
  0x4c   : > { %s1238_s18 = sld [smem:[#allocation4 + $0x1]]  ;;  %s1242_s6 = scalar_lea.vmem [#allocation11], %s652_s0 }
  0x4d   : > { %s1240_s30 = sld [smem:[#allocation4 + $0x2]] }
  0x4e   : > { %s1371_s12 = sld [smem:[#allocation17_spill]] }
  0x54   : > { %p655_p3 = scmp.ne.s32.totalorder %s1371_s12, 0 }
  0x55   : > { %s1372_s13 = sld [smem:[#allocation25_spill]] (!%p655_p3) }
  0x56   : > { %294 = sbr.rel (%p655_p3) target bundleno = 378 (0x17a), region = 52 }
  0x5b   : > { %v295_v0 = vld [vmem:[%s246_s22] sm:$0xff]  ;;  %v296_v1 = vld [vmem:[%s246_s22 + $0x8] sm:$0xff]  ;;  %v309_v5 = vstv %s288_s4  ;;  %v297_v6 = vld [vmem:[%s246_s22 + $0x10] sm:$0xff]  ;;  %vm380_vm0 = vcmask 0   ;;  %v1027_v34 = vmov 0.0  }
  0x5c   : > { %v299_v2 = vld [vmem:[%s1372_s13] sm:$0x3]  ;;  %v298_v7 = vld [vmem:[%s246_s22 + $0x18] sm:$0xff]  ;;  %381 = vst.msk [vmem:[#allocation3] sm:$0x1] %vm380_vm0, %v1027_v34 }
  0x5d   : > { %v301_v3 = vperm.slane %v299_v2, 0  ;;  %v302_v4 = vperm.slane %v299_v2, 1 }
  0x5f   : > { %v305_v8 = vsub.f32 %v295_v0, %v301_v3  ;;  %v306_v9 = vsub.f32 %v296_v1, %v302_v4  ;;  %v307_v12 = vsub.f32 %v297_v6, %v301_v3  ;;  %v308_v13 = vsub.f32 %v298_v7, %v302_v4 }
  0x61   : > { %v310_v10 = vmul.f32 %v309_v5, %v305_v8  ;;  %v311_v11 = vmul.f32 %v309_v5, %v306_v9  ;;  %v312_v15 = vmul.f32 %v309_v5, %v307_v12  ;;  %v313_v16 = vmul.f32 %v309_v5, %v308_v13 }
  0x63   : > { %v314_v14 = vmax.f32 %v310_v10, %v311_v11  ;;  %v317_v17 = vmax.f32 %v312_v15, %v313_v16 }
  0x65   : > { %315 = vmax.xlane.f32.xlu0 %v314_v14 }
  0x6d   : > { %318 = vmax.xlane.f32.xlu0 %v317_v17 }
  0xd8   : > { %v316_v18 = vpop.xlane.xlu0 %315 }
  0xd9   : > { %v320_v19 = vsub.f32 %v310_v10, %v316_v18  ;;  %v321_v20 = vsub.f32 %v311_v11, %v316_v18 }
  0xdb   : > { %v324_v21 = vmul.f32 1.442695, %v320_v19  ;;  %v326_v22 = vmul.f32 1.442695, %v321_v20 }
  0xdd   : > { %796 = vpow2.f32 %v324_v21 }
  0xde   : > { %798 = vpow2.f32 %v326_v22 }
  0xe0   : > { %v319_v23 = vpop.xlane.xlu0 %318 }
  0xe1   : > { %v322_v24 = vsub.f32 %v312_v15, %v319_v23  ;;  %v323_v25 = vsub.f32 %v313_v16, %v319_v23 }
  0xe3   : > { %v797_v26 = vpop.eup %796  ;;  %v328_v27 = vmul.f32 1.442695, %v322_v24  ;;  %v330_v28 = vmul.f32 1.442695, %v323_v25 }
  0xe4   : > { %v799_v29 = vpop.eup %798 }
  0xe5   : > { %800 = vpow2.f32 %v328_v27  ;;  %v332_v30 = vadd.f32 %v799_v29, %v797_v26 }
  0xe6   : > { %802 = vpow2.f32 %v330_v28 }
  0xe7   : > { %333 = vadd.xlane.f32.xlu1 %v332_v30 }
  0xeb   : > { %v801_v31 = vpop.eup %800 }
  0xec   : > { %v803_v32 = vpop.eup %802 }
  0xed   : > { %v335_v33 = vadd.f32 %v803_v32, %v801_v31 }
  0xef   : > { %336 = vadd.xlane.f32.xlu1 %v335_v33 }
 0x15a   : > { %v334_v35 = vpop.xlane.xlu1 %333 }
 0x15b   : > { %804 = vrcp.f32 %v334_v35  ;;  %v349_v40 = vand.u32 2147483648, %v334_v35  ;;  %v347_v42 = vand.u32 2147483647, %v334_v35  ;;  %vm343_vm2 = vweird.f32 %v334_v35 }
 0x15d   : > { %v350_v45 = vor.u32 1.1754944e-38, %v349_v40  ;;  %vm348_vm4 = vcmp.eq.f32.partialorder %v347_v42, 8.507059e+37 }
 0x161   : > { %v805_v36 = vpop.eup %804 }
 0x162   : > { %v339_v37 = vmul.f32 %v805_v36, %v334_v35  ;;  %v337_v38 = vpop.xlane.xlu1 %336  ;;  %vm344_vm1 = vweird.f32 %v805_v36 }
 0x163   : > { %806 = vrcp.f32 %v337_v38  ;;  %vm345_vm3 = vmor %vm343_vm2, %vm344_vm1  ;;  %v365_v52 = vand.u32 2147483648, %v337_v38  ;;  %v363_v54 = vand.u32 2147483647, %v337_v38  ;;  %vm359_vm6 = vweird.f32 %v337_v38 }
 0x164   : > { %v340_v39 = vsub.f32 1.0, %v339_v37 }
 0x165   : > { %v366_v56 = vor.u32 1.1754944e-38, %v365_v52  ;;  %vm364_vm8 = vcmp.eq.f32.partialorder %v363_v54, 8.507059e+37 }
 0x166   : > { %v341_v41 = vmul.f32 %v805_v36, %v340_v39 }
 0x168   : > { %v342_v43 = vadd.f32 %v805_v36, %v341_v41 }
 0x169   : > { %v807_v44 = vpop.eup %806 }
 0x16a   : > { %v346_v46 = vsel %vm345_vm3, %v805_v36, %v342_v43  ;;  %v355_v47 = vmul.f32 %v807_v44, %v337_v38  ;;  %vm360_vm5 = vweird.f32 %v807_v44 }
 0x16b   : > { %v351_v48 = vsel %vm348_vm4, %v350_v45, %v346_v46  ;;  %vm361_vm7 = vmor %vm359_vm6, %vm360_vm5 }
 0x16c   : > { %v352_v49 = vmul.f32 %v797_v26, %v351_v48  ;;  %v353_v50 = vmul.f32 %v799_v29, %v351_v48  ;;  %v356_v51 = vsub.f32 1.0, %v355_v47 }
 0x16e   : > { %370 = vst [vmem:[#allocation2 + $0x28] sm:$0xff] %v352_v49  ;;  %v357_v53 = vmul.f32 %v807_v44, %v356_v51 }
 0x16f   : > { %371 = vst [vmem:[#allocation2 + $0x10] sm:$0xff] %v353_v50 }
 0x170   : > { %v358_v55 = vadd.f32 %v807_v44, %v357_v53 }
 0x172   : > { %v362_v57 = vsel %vm361_vm7, %v807_v44, %v358_v55 }
 0x173   : > { %v367_v58 = vsel %vm364_vm8, %v366_v56, %v362_v57 }
 0x174   : > { %v368_v59 = vmul.f32 %v801_v31, %v367_v58  ;;  %v369_v60 = vmul.f32 %v803_v32, %v367_v58 }
 0x176   : > { %373 = vst [vmem:[#allocation2 + $0x8] sm:$0xff] %v368_v59  ;;  %v375_v61 = vadd.f32 %v368_v59, %v352_v49  ;;  %v376_v62 = vadd.f32 %v369_v60, %v353_v50 }
 0x177   : > { %374 = vst [vmem:[#allocation2] sm:$0xff] %v369_v60 }
 0x178   : > { %378 = vst [vmem:[#allocation2 + $0x18] sm:$0xff] %v375_v61 }
 0x179   : > { %379 = vst [vmem:[#allocation2 + $0x20] sm:$0xff] %v376_v62 }
 0x17a PF: > { %v382_v63 = vld [vmem:[%s256_s7] sm:$0xff]  ;;  %v383_v0 = vld [vmem:[%s256_s7 + $0x8] sm:$0xff]  ;;  %v384_v1 = vstv %s1238_s18  ;;  %vm401_vm9 = vcmask 7168  }
 0x17b   : > { %v385_v2 = vmul.f32 %v384_v1, %v382_v63  ;;  %v386_v3 = vmul.f32 %v384_v1, %v383_v0 }
 0x17d   : > { %v387_v4 = vmax.f32 %v385_v2, %v386_v3 }
 0x17f   : > { %388 = vmax.xlane.f32.xlu0 %v387_v4 }
 0x1f2   : > { %v389_v5 = vpop.xlane.xlu0 %388 }
 0x1f3   : > { %v1255_v6 = vsub.f32 %v385_v2, %v389_v5  ;;  %v1257_v7 = vsub.f32 %v386_v3, %v389_v5 }
 0x1f5   : > { %v392_v8 = vmul.f32 1.442695, %v1255_v6  ;;  %v394_v9 = vmul.f32 1.442695, %v1257_v7 }
 0x1f7   : > { %808 = vpow2.f32 %v392_v8 }
 0x1f8   : > { %810 = vpow2.f32 %v394_v9 }
 0x1fd   : > { %v809_v10 = vpop.eup %808 }
 0x1fe   : > { %v811_v11 = vpop.eup %810 }
 0x1ff   : > { %v396_v12 = vadd.f32 %v811_v11, %v809_v10 }
 0x201   : > { %397 = vadd.xlane.f32.xlu0 %v396_v12 }
 0x274   : > { %v398_v13 = vpop.xlane.xlu0 %397 }
 0x275   : > { %812 = vlog2.f32 %v398_v13 }
 0x27b   : > { %v813_v14 = vpop.eup %812 }
 0x27c   : > { %v400_v15 = vmul.f32 0.6931472, %v813_v14 }
 0x27e   : > { %v402_v16 = vsel %vm401_vm9, %v400_v15, 0.0 }
 0x27f   : > { %403 = vadd.xlane.f32.xlu1 %v402_v16 }
 0x2f2   : > { %v404_v17 = vpop.xlane.xlu1 %403 }
 0x2f3   : > { %v405_v18 = vrot.slane %v404_v17, 4 }
 0x2f5   : > { %v406_v19 = vadd.f32 %v405_v18, %v404_v17 }
 0x2f7   : > { %v407_v20 = vrot.slane %v406_v19, 2 }
 0x2f9   : > { %v408_v21 = vadd.f32 %v407_v20, %v406_v19 }
 0x2fb   : > { %v409_v22 = vrot.slane %v408_v21, 1 }
 0x2fd   : > { %v410_v23 = vadd.f32 %v409_v22, %v408_v21 }
 0x2ff   : > { %665 = vpush %v410_v23 }
 0x32c   : > { %414 = sbr.rel (%p655_p3) target bundleno = 1008 (0x3f0), region = 56 }
 0x330   : > { %s1261_s11 = spop %665 }
 0x331   : > { %v417_v24 = vld [vmem:[#allocation2 + $0x8] sm:$0xff]  ;;  %v418_v25 = vld [vmem:[#allocation2] sm:$0xff]  ;;  %v415_v36 = vld [vmem:[#allocation3] sm:$0x1]  ;;  %vm435_vm10 = vcmask 0  }
 0x332   : > { %v419_v26 = vmul.f32 %v417_v24, %v1255_v6  ;;  %v420_v27 = vmul.f32 %v418_v25, %v1257_v7 }
 0x334   : > { %v421_v28 = vadd.f32 %v420_v27, %v419_v26 }
 0x336   : > { %422 = vadd.xlane.f32.xlu0 %v421_v28 }
 0x3a9   : > { %v423_v29 = vpop.xlane.xlu0 %422 }
 0x3aa   : > { %v424_v30 = vrot.slane %v423_v29, 4 }
 0x3ac   : > { %v425_v31 = vadd.f32 %v424_v30, %v423_v29 }
 0x3ae   : > { %v426_v32 = vrot.slane %v425_v31, 2 }
 0x3b0   : > { %v427_v33 = vadd.f32 %v426_v32, %v425_v31 }
 0x3b2   : > { %v428_v34 = vrot.slane %v427_v33, 1 }
 0x3b4   : > { %v429_v35 = vadd.f32 %v428_v34, %v427_v33 }
 0x3b6   : > { %667 = vpush %v429_v35 }
 0x3e7   : > { %s668_s3 = spop %667 }
 0x3e8   : > { %s431_s21 = ssub.f32 %s1261_s11, %s668_s3 }
 0x3ea   : > { %s432_s22 = smul.f32 %s1240_s30, %s431_s21 }
 0x3ec   : > { %v433_v37 = vstv %s432_s22 }
 0x3ed   : > { %v434_v38 = vadd.f32 %v433_v37, %v415_v36 }
 0x3ef   : > { %436 = vst.msk [vmem:[#allocation3] sm:$0x1] %vm435_vm10, %v434_v38 }
 0x3f0 PF: > { %s1374_s5 = sld [smem:[#allocation17_spill]] }
 0x3f6   : > { %p657_p6 = scmp.ne.s32.totalorder %s1374_s5, 1 }
 0x3f8   : > { %440 = sbr.rel (%p657_p6) target bundleno = 1212 (0x4bc), region = 60 }
 0x3fd   : > { %v442_v39 = vld [vmem:[#allocation2 + $0x28] sm:$0xff]  ;;  %v443_v40 = vld [vmem:[#allocation2 + $0x10] sm:$0xff]  ;;  %vm460_vm11 = vcmask 0  }
 0x3fe   : > { %v444_v41 = vmul.f32 %v442_v39, %v1255_v6  ;;  %v445_v42 = vmul.f32 %v443_v40, %v1257_v7  ;;  %v441_v51 = vld [vmem:[#allocation3] sm:$0x1] }
 0x400   : > { %v446_v43 = vadd.f32 %v445_v42, %v444_v41 }
 0x402   : > { %447 = vadd.xlane.f32.xlu0 %v446_v43 }
 0x475   : > { %v448_v44 = vpop.xlane.xlu0 %447 }
 0x476   : > { %v449_v45 = vrot.slane %v448_v44, 4 }
 0x478   : > { %v450_v46 = vadd.f32 %v449_v45, %v448_v44 }
 0x47a   : > { %v451_v47 = vrot.slane %v450_v46, 2 }
 0x47c   : > { %v452_v48 = vadd.f32 %v451_v47, %v450_v46 }
 0x47e   : > { %v453_v49 = vrot.slane %v452_v48, 1 }
 0x480   : > { %v454_v50 = vadd.f32 %v453_v49, %v452_v48 }
 0x482   : > { %669 = vpush %v454_v50 }
 0x4b3   : > { %s670_s10 = spop %669 }
 0x4b4   : > { %s456_s26 = ssub.f32 %s1261_s11, %s670_s10 }
 0x4b6   : > { %s457_s28 = smul.f32 %s1240_s30, %s456_s26 }
 0x4b8   : > { %v458_v52 = vstv %s457_s28 }
 0x4b9   : > { %v459_v53 = vadd.f32 %v458_v52, %v441_v51 }
 0x4bb   : > { %461 = vst.msk [vmem:[#allocation3] sm:$0x1] %vm460_vm11, %v459_v53 }
 0x4bc PF: > { %s1375_s7 = sld [smem:[#allocation17_spill]] }
 0x4c2   : > { %p658_p12 = scmp.lt.s32.totalorder %s1375_s7, 2 }
 0x4c3   : > { %s467_s0 = smul.f32 (!%p658_p12), 2.0, %s1261_s11 }
 0x4c4   : > { %465 = sbr.rel (%p658_p12) target bundleno = 1416 (0x588), region = 64 }
 0x4c9   : > { %v469_v54 = vld [vmem:[#allocation2 + $0x18] sm:$0xff]  ;;  %v470_v55 = vld [vmem:[#allocation2 + $0x20] sm:$0xff]  ;;  %v466_v2 = vld [vmem:[#allocation3] sm:$0x1]  ;;  %vm487_vm12 = vcmask 0  }
 0x4ca   : > { %v471_v56 = vmul.f32 %v469_v54, %v1255_v6  ;;  %v472_v57 = vmul.f32 %v470_v55, %v1257_v7 }
 0x4cc   : > { %v473_v58 = vadd.f32 %v472_v57, %v471_v56 }
 0x4ce   : > { %474 = vadd.xlane.f32.xlu0 %v473_v58 }
 0x541   : > { %v475_v59 = vpop.xlane.xlu0 %474 }
 0x542   : > { %v476_v60 = vrot.slane %v475_v59, 4 }
 0x544   : > { %v477_v61 = vadd.f32 %v476_v60, %v475_v59 }
 0x546   : > { %v478_v62 = vrot.slane %v477_v61, 2 }
 0x548   : > { %v479_v63 = vadd.f32 %v478_v62, %v477_v61 }
 0x54a   : > { %v480_v0 = vrot.slane %v479_v63, 1 }
 0x54c   : > { %v481_v1 = vadd.f32 %v480_v0, %v479_v63 }
 0x54e   : > { %671 = vpush %v481_v1 }
 0x57f   : > { %s672_s4 = spop %671 }
 0x580   : > { %s483_s18 = ssub.f32 %s467_s0, %s672_s4 }
 0x582   : > { %s484_s12 = smul.f32 %s1240_s30, %s483_s18 }
 0x584   : > { %v485_v3 = vstv %s484_s12 }
 0x585   : > { %v486_v4 = vadd.f32 %v485_v3, %v466_v2 }
 0x587   : > { %488 = vst.msk [vmem:[#allocation3] sm:$0x1] %vm487_vm12, %v486_v4 }
 0x588 PF: > { %s1376_s15 = sld [smem:[#allocation17_spill]] }
 0x58e   : > { %p659_p0 = scmp.ne.s32.totalorder %s1376_s15, 3 }
 0x590   : > { %492 = sbr.rel (%p659_p0) target bundleno = 1547 (0x60b), region = 68 }
 0x595   : > { %v815_v5 = vld [vmem:[#allocation3] ss:$0 sm:$0xff]  ;;  %v1028_v6 = vmov 0  }
 0x596   : > { %814 = vset.pattern.permute.xlu0 %v1028_v6 }
 0x597   : > { %497 = vperm.xlu0 %814, %v815_v5  }
 0x609   : > { %v498_v7 = vpop.permute.xlu0 %497 }
 0x60a   : > { %500 = vst [vmem:[%s1242_s6] sm:$0xff] %v498_v7 }
 0x60b PF: > { %s1377_s9 = sld [smem:[#allocation18_spill]]  ;;  %s514_s22 = sshll.u32 %s1242_s6, 4  ;;  %s515_s22 = int_to_ptr.vmem [resolvable:$true] %s514_s22 }
 0x60c   : > { %s1379_s3 = sld [smem:[#allocation26_spill]]  ;;  %s502_s10 = scalar_lea.sflag [#allocation6], %s1221_s1 }
 0x611   : > { %s661_s13 = sshll.u32 %s1377_s9, 3 }
 0x612   : > { %s512_s21 = scalar_lea.hbm %s1379_s3, %s661_s13  ;;  %s911_s4 = scalar_lea.hbm %s1379_s3, 16 }
 0x613   : > { %s516_s5 = sshll.u32 %s512_s21, 4  ;;  %s517_s5 = int_to_ptr.hbm [resolvable:$true] %s516_s5 }
 0x614   : > { %s905_s26 = sshra.s32 %s517_s5, 4  ;;  %s906_s26 = int_to_ptr.hbm [resolvable:$true] %s905_s26 }
 0x615   : > { %s907_s28 = scalar_lea.hbm %s906_s26, 8  ;;  %p912_p13 = scmp.lt.s32.totalorder %s906_s26, %s1379_s3 }
 0x616   : > { %p908_p7 = scmp.ne.s32.totalorder %s906_s26, %s907_s28  ;;  %p913_p2 = scmp.lt.s32.totalorder %s911_s4, %s907_s28 }
 0x618   : > { %p909_p9 = pnand %p908_p7, %p1132_p8  ;;  %p914_p5 = por %p913_p2, %p912_p13 }
 0x61a   : > { %p910_p11 = pneg %p909_p9 }
 0x61c   : > { %p915_p4 = pnand %p914_p5, %p910_p11 }
 0x61e   : > { %918 = shalt.err (!%p915_p4)
}
 0x61f   : > { %681 = dma.vmem_to_hbm [thread:$0]  (%p1132_p8), %s515_s22, 128, %s517_s5, %s502_s10  }
 0x620 PF: > { %s1380_s1 = sld [smem:[#allocation16_spill]]  ;;  %p701_p1 = scmp.ge.s32.totalorder %s1021_s25, 2 }
 0x622   : > { %p695_p3 = pnand %p701_p1, %p1137_p10 }
 0x624   : > { %p696_p6 = pneg %p695_p3 }
 0x626   : > { %s528_s15 = sand.u32 1, %s1380_s1  }
 0x627   : > { %s529_s9 = scalar_lea.sflag [#allocation6], %s528_s15 }
 0x628   : > { %976 = dma.done.wait (%p696_p6), %s529_s9, 128  }
 0x629   : > { %978 = vsyncadd (%p696_p6), %s529_s9, 4294967168  ;;  %s24_s25 = sadd.s32 1, %s1021_s25   ;;  %s1382_s30 = sld [smem:[#allocation21_spill]] }
 0x62a   : > { %p21_p12 = scmp.ge.s32.totalorder %s24_s25, 10   ;;  %s1383_s15 = smov %s985_s16 }
 0x62b   : > { %s1384_s16 = smov %s989_s17  ;;  %s1385_s17 = smov %s1203_s29 }
 0x62c   : > { %s1386_s18 = smov %s997_s19  ;;  %s1387_s19 = smov %s1001_s20 }
 0x62d   : > { %s1388_s20 = smov %s1200_s8  ;;  %s1389_s21 = smov %s1013_s23 }
 0x62e   : > { %s1390_s22 = smov %s1017_s24  ;;  %s1392_s24 = smov %s1398_s14 }
 0x62f   : > { %s1391_s23 = smov %s1382_s30  ;;  %23 = sbr.rel (!%p21_p12) target bundleno = 17 (0x11), region = 123 }
 0x634   :  { %535 = vsyncpa [#allocation5], 1 }
 0x635   :  { %537 = vsyncpa [#allocation5 + $0x1], 1 }
 0x636   :  { %538 = vsyncpa [#allocation10], 1 }
 0x637   :  { %540 = vsyncpa [#allocation10 + $0x1], 1 }
 0x638   :  { %541 = vsyncpa [#allocation6], 1 }
 0x639   :  { %543 = vsyncpa [#allocation6 + $0x1], 1 }
 0x63a   :  { %544 = vsyncpa [#allocation7], 1 }
 0x63b   :  { %546 = vsyncpa [#allocation7 + $0x1], 1 }

</bundles_post_ra>
